<compile_context>
chip_gen: v7x
topology: tpu7x:2x2x1
jax: 0.10.0
libtpu: 0.0.40
codegen_flags: <defaults>
</compile_context>

<pallas_src>
import numpy as np
import jax
import jax.numpy as jnp
from jax import lax
from jax.experimental import pallas as pl
from jax.experimental.pallas import tpu as pltpu

R = 1.0
LATENT_DIM = 960
_EPS = 1e-12            # matches F.normalize eps


def _round_up(x, m):
    return ((x + m - 1) // m) * m


def _proto_head_kernel(f_ref, p_ref, dists_ref):
    # f_ref:     (TILE_B, D) raw feature tile (f32 or bf16)
    # p_ref:     (C, D)      raw prototypes (f32, reused every grid step)
    # dists_ref: (C, TILE_B) lane-dense (batch on lanes)
    f = f_ref[...].astype(jnp.float32)               # in-register upcast if bf16
    p = p_ref[...]                                   # (C, D) f32
    eps2 = jnp.float32(_EPS * _EPS)

    # Prototype row norms -> (C, 1); broadcasts along lanes of the (C, TB) output.
    psq = jnp.sum(p * p, axis=-1, keepdims=True)                      # (C, 1)
    inv_p = lax.rsqrt(jnp.maximum(psq, eps2))                         # == 1 / max(||p||, eps)
    pn2 = psq * inv_p * inv_p                                         # 1.0 (0.0 for zero rows)

    # Feature row norms, produced directly in lane-dense (1, TB) orientation
    # (avoids a (TB,1)->(1,TB) sublane->lane transpose).
    fsq = f * f
    ones_d = jnp.ones((1, f.shape[1]), jnp.float32)
    fsq_sum = lax.dot_general(ones_d, fsq, (((1,), (1,)), ((), ())),
                              preferred_element_type=jnp.float32)     # (1, TB)
    inv_f = lax.rsqrt(jnp.maximum(fsq_sum, eps2))                     # (1, TB)
    fn2 = fsq_sum * inv_f * inv_f                                     # (1, TB)

    # Raw (un-normalized) dot products on the MXU; normalization applied afterwards.
    dot = lax.dot_general(p, f, (((1,), (1,)), ((), ())),
                          preferred_element_type=jnp.float32)         # (C, TB)

    # ||fn - pn||^2 = fn2 + pn2 - 2 * (f.p) * inv_f * inv_p, clamped >= 0 (cdist**2).
    dists_ref[...] = jnp.maximum(pn2 + fn2 - 2.0 * dot * (inv_p * inv_f), 0.0)


def sim_ghost_head(features, prototypes, *, tile_b=1024):
    """features: (B, 960) f32/bf16, prototypes: (C, 960) -> (logits, dists), each (B, C) f32."""
    B, D = features.shape
    C, D2 = prototypes.shape
    assert D == D2

    # bf16 features are kept as-is (halves the dominant HBM stream); anything else -> f32.
    if features.dtype != jnp.bfloat16:
        features = features.astype(jnp.float32)
    prototypes = prototypes.astype(jnp.float32)

    # Balanced batch tiling:
    #  * one tile  -> round B up to a multiple of 8 only (minimal padding);
    #  * >1 tiles  -> split B evenly, round the tile to a multiple of 128 so the
    #    (C, tb) output blocks keep unmasked lane-dense stores. This also keeps
    #    >=2 "parallel" grid steps whenever B >= 2*tile_b (v7x megacore).
    num_tiles = pl.cdiv(B, tile_b)
    if num_tiles == 1:
        tb = _round_up(B, 8)
    else:
        tb = _round_up(pl.cdiv(B, num_tiles), 128)
        num_tiles = pl.cdiv(B, tb)          # rounding may reduce the tile count
    Bp = num_tiles * tb
    if Bp != B:
        features = jnp.pad(features, ((0, Bp - B), (0, 0)))

    dists_t = pl.pallas_call(
        _proto_head_kernel,
        out_shape=jax.ShapeDtypeStruct((C, Bp), jnp.float32),   # dists, transposed
        grid=(num_tiles,),
        in_specs=[
            pl.BlockSpec((tb, D), lambda i: (i, 0)),            # feature batch tile
            pl.BlockSpec((C, D), lambda i: (0, 0)),             # prototypes, full block
        ],
        out_specs=pl.BlockSpec((C, tb), lambda i: (0, i)),
        compiler_params=pltpu.CompilerParams(dimension_semantics=("parallel",)),
    )(features, prototypes)

    # Back to the module's (B, C) layout; drop batch padding. logits is a trivial affine
    # of dists, computed here instead of doubling the kernel's output stores.
    dists = jnp.transpose(dists_t)[:B]
    logits = 10.0 * (jnp.float32(R) - dists)
    return logits, dists


def _reference_head(features, prototypes):
    eps = _EPS
    features = np.asarray(features, dtype=np.float32)
    prototypes = np.asarray(prototypes, dtype=np.float32)
    fn = features / np.maximum(np.linalg.norm(features, axis=1, keepdims=True), eps)
    pn = prototypes / np.maximum(np.linalg.norm(prototypes, axis=1, keepdims=True), eps)
    d2 = np.maximum(
        (fn * fn).sum(1, keepdims=True) + (pn * pn).sum(1)[None, :] - 2.0 * fn @ pn.T,
        0.0,
    )
    return 10.0 * (R - d2), d2


def _check(features, prototypes, *, tile_b=1024, atol_d=1e-3, atol_l=1e-2):
    logits, dists = sim_ghost_head(features, prototypes, tile_b=tile_b)
    jax.block_until_ready((logits, dists))
    ref_logits, ref_dists = _reference_head(np.asarray(features, dtype=np.float32),
                                            np.asarray(prototypes))
    assert dists.shape == ref_dists.shape and logits.shape == ref_logits.shape
    assert np.allclose(np.asarray(dists), ref_dists, atol=atol_d, rtol=1e-3), \
        float(np.abs(np.asarray(dists) - ref_dists).max())
    assert np.allclose(np.asarray(logits), ref_logits, atol=atol_l, rtol=1e-3), \
        float(np.abs(np.asarray(logits) - ref_logits).max())


if __name__ == "__main__":
    # Deterministic synthetic setup: 8 classes, latent_dim fixed at 960 by the module.
    classid_list = list(range(8))
    num_classes = len(classid_list)

    key = jax.random.PRNGKey(0)
    k_feat, k_proto, k_feat2 = jax.random.split(key, 3)
    # nn.init.normal_(self.prototypes) -> standard normal.
    prototypes = jax.random.normal(k_proto, (num_classes, LATENT_DIM), dtype=jnp.float32)

    # Small case (stand-in for ghostnet features; backbone not translated, see TODO).
    features = jax.random.normal(k_feat, (2, LATENT_DIM), dtype=jnp.float32)
    _check(features, prototypes)

    # Non-multiple-of-8 batch: single balanced tile (260 -> 264 rows, not 512).
    features2 = jax.random.normal(k_feat2, (260, LATENT_DIM), dtype=jnp.float32)
    _check(features2, prototypes)

    # Force the multi-tile ("parallel" grid) path with lane-dense 128-wide output blocks.
    _check(features2, prototypes, tile_b=128)

    # bf16 feature path (halved HBM read stream); looser tolerance for the bf16 inputs.
    _check(features2.astype(jnp.bfloat16), prototypes, atol_d=2e-2, atol_l=2e-1)

    print("KERNEL_OK")
</pallas_src>

<mosaic_0001>
module attributes {stable_mosaic.version = 11 : i64} {
  func.func @_proto_head_kernel(%arg0: i32, %arg1: memref<8x960xf32, #tpu.memory_space<vmem>>, %arg2: memref<8x960xf32, #tpu.memory_space<vmem>>, %arg3: memref<8x8xf32, #tpu.memory_space<vmem>>) attributes {dimension_semantics = [#tpu.dimension_semantics<parallel>], iteration_bounds = array<i64: 1>, scalar_prefetch = 0 : i64, scratch_operands = 0 : i64, tpu.core_type = #tpu.core_type<tc>, window_params = [{transform_indices = @transform_0, window_bounds = array<i64: 8, 960>}, {pipeline_mode = #tpu.pipeline_mode<synchronous>, transform_indices = @transform_1, window_bounds = array<i64: 8, 960>}, {transform_indices = @transform_2, window_bounds = array<i64: 8, 8>}]} {
    %c0 = arith.constant 0 : index
    %c0_0 = arith.constant 0 : index
    %0 = vector.load %arg1[%c0, %c0_0] : memref<8x960xf32, #tpu.memory_space<vmem>>, vector<8x960xf32>
    %c0_1 = arith.constant 0 : index
    %c0_2 = arith.constant 0 : index
    %1 = vector.load %arg2[%c0_1, %c0_2] : memref<8x960xf32, #tpu.memory_space<vmem>>, vector<8x960xf32>
    %2 = arith.mulf %1, %1 : vector<8x960xf32>
    %cst = arith.constant dense<0.000000e+00> : vector<8xf32>
    %3 = vector.multi_reduction <add>, %2, %cst [1] : vector<8x960xf32> to vector<8xf32>
    %4 = vector.shape_cast %3 : vector<8xf32> to vector<8x1xf32>
    %cst_3 = arith.constant 1.000000e-24 : f32
    %5 = vector.broadcast %cst_3 : f32 to vector<8x1xf32>
    %6 = arith.maximumf %4, %5 : vector<8x1xf32>
    %7 = math.rsqrt %6 : vector<8x1xf32>
    %8 = arith.mulf %4, %7 : vector<8x1xf32>
    %9 = arith.mulf %8, %7 : vector<8x1xf32>
    %10 = arith.mulf %0, %0 : vector<8x960xf32>
    %cst_4 = arith.constant 1.000000e+00 : f32
    %11 = vector.broadcast %cst_4 : f32 to vector<1x960xf32>
    %cst_5 = arith.constant dense<0.000000e+00> : vector<1x8xf32>
    %12 = tpu.matmul %11, %10, %cst_5 {dimension_numbers = #tpu.dot_dimension_numbers<[1], [1], [0], [0], [0, 0, 1, 0], [], []>} : vector<1x960xf32>, vector<8x960xf32>, vector<1x8xf32> -> vector<1x8xf32>
    %cst_6 = arith.constant 1.000000e-24 : f32
    %13 = vector.broadcast %cst_6 : f32 to vector<1x8xf32>
    %14 = arith.maximumf %12, %13 : vector<1x8xf32>
    %15 = math.rsqrt %14 : vector<1x8xf32>
    %16 = arith.mulf %12, %15 : vector<1x8xf32>
    %17 = arith.mulf %16, %15 : vector<1x8xf32>
    %cst_7 = arith.constant dense<0.000000e+00> : vector<8x8xf32>
    %18 = tpu.matmul %1, %0, %cst_7 {dimension_numbers = #tpu.dot_dimension_numbers<[1], [1], [0], [0], [0, 0, 1, 0], [], []>} : vector<8x960xf32>, vector<8x960xf32>, vector<8x8xf32> -> vector<8x8xf32>
    %19 = vector.broadcast %9 : vector<8x1xf32> to vector<8x8xf32>
    %20 = vector.broadcast %17 : vector<1x8xf32> to vector<8x8xf32>
    %21 = arith.addf %19, %20 : vector<8x8xf32>
    %cst_8 = arith.constant 2.000000e+00 : f32
    %22 = vector.broadcast %cst_8 : f32 to vector<8x8xf32>
    %23 = arith.mulf %22, %18 : vector<8x8xf32>
    %24 = vector.broadcast %7 : vector<8x1xf32> to vector<8x8xf32>
    %25 = vector.broadcast %15 : vector<1x8xf32> to vector<8x8xf32>
    %26 = arith.mulf %24, %25 : vector<8x8xf32>
    %27 = arith.mulf %23, %26 : vector<8x8xf32>
    %28 = arith.subf %21, %27 : vector<8x8xf32>
    %cst_9 = arith.constant 0.000000e+00 : f32
    %29 = vector.broadcast %cst_9 : f32 to vector<8x8xf32>
    %30 = arith.maximumf %28, %29 : vector<8x8xf32>
    %c0_10 = arith.constant 0 : index
    %c0_11 = arith.constant 0 : index
    %31 = vector.load %arg3[%c0_10, %c0_11] : memref<8x8xf32, #tpu.memory_space<vmem>>, vector<8x8xf32>
    tpu.vector_store %arg3[%c0_10, %c0_11], %30 {strides = array<i32>} : memref<8x8xf32, #tpu.memory_space<vmem>>, vector<8x8xf32>,
    return
  }
  func.func @transform_0(%arg0: i32) -> (i32, i32) {
    %c0_i32 = arith.constant 0 : i32
    %c0_i32_0 = arith.constant 0 : i32
    return %arg0, %c0_i32 : i32, i32
  }
  func.func @transform_1(%arg0: i32) -> (i32, i32) {
    %c0_i32 = arith.constant 0 : i32
    %c0_i32_0 = arith.constant 0 : i32
    %c0_i32_1 = arith.constant 0 : i32
    return %c0_i32, %c0_i32_0 : i32, i32
  }
  func.func @transform_2(%arg0: i32) -> (i32, i32) {
    %c0_i32 = arith.constant 0 : i32
    %c0_i32_0 = arith.constant 0 : i32
    return %c0_i32, %arg0 : i32, i32
  }
}

</mosaic_0001>

<bundles_post_ra>
// kernel: tpu_custom_call.1
= control target key start
LH: loop header
LB: loop body
LE: loop exit
PB: predicated region body
PF: predicated region fallthrough
CT: control target
= control target key end

     0   :  { %7 = vsyncpa [#allocation3], 0  ;;  %s855_s0 = inlined_call_operand.hbm [shape: f32[8,960], index: 0, kind: input, shape index: {}]   ;;  %s856_s1 = inlined_call_operand.hbm [shape: f32[8,960], index: 1, kind: input, shape index: {}]   ;;  %s857_s2 = inlined_call_operand.hbm [shape: f32[8,8], index: 2, kind: output, shape index: {}]  }
   0x1   :  { %8 = vsyncpa [#allocation6], 0 }
   0x2   :  { %9 = vsyncpa [#allocation4], 0  ;;  %s787_s9 = smov [#allocation2]   ;;  %s788_s11 = smov [#allocation5]  }
   0x3   :  { %s16_s10 = sshll.u32 %s787_s9, 4  ;;  %s26_s12 = sshll.u32 %s788_s11, 4  ;;  %s17_s10 = int_to_ptr.vmem [resolvable:$true] %s16_s10  ;;  %s27_s12 = int_to_ptr.vmem [resolvable:$true] %s26_s12 }
   0x4   :  { %s715_s15 = scalar_lea.hbm %s855_s0, 1024 }
   0x5   :  { %p716_p0 = scmp.ne.s32.totalorder %s855_s0, %s715_s15  ;;  %p719_p1 = scmp.lt.u32.totalorder %s715_s15, %s855_s0 }
   0x7   :  { %p721_p2 = pnand %p719_p1, %p716_p0 }
   0x9   :  { %724 = shalt.err (!%p721_p2)
}
   0xa   :  { %s725_s20 = scalar_lea.vmem %s17_s10, 1024  ;;  %p730_p4 = scmp.lt.s32.totalorder %s17_s10, %s17_s10 }
   0xb   :  { %p726_p3 = scmp.ne.s32.totalorder %s17_s10, %s725_s20  ;;  %p731_p5 = scmp.lt.s32.totalorder %s725_s20, %s725_s20 }
   0xd   :  { %p732_p6 = por %p731_p5, %p730_p4 }
   0xf   :  { %p733_p7 = pnand %p732_p6, %p726_p3 }
  0x11   :  { %736 = shalt.err (!%p733_p7)
}
  0x12   :  { %19 = dma.hbm_to_vmem [thread:$0]  %s855_s0, 1024, %s17_s10, [#allocation3]  }
  0x13   :  { %s737_s25 = scalar_lea.hbm %s856_s1, 1024 }
  0x14   :  { %p738_p8 = scmp.ne.s32.totalorder %s856_s1, %s737_s25  ;;  %p741_p9 = scmp.lt.u32.totalorder %s737_s25, %s856_s1 }
  0x16   :  { %p743_p10 = pnand %p741_p9, %p738_p8 }
  0x18   :  { %746 = shalt.err (!%p743_p10)
}
  0x19   :  { %s747_s30 = scalar_lea.vmem %s27_s12, 1024  ;;  %p752_p12 = scmp.lt.s32.totalorder %s27_s12, %s27_s12 }
  0x1a   :  { %p748_p11 = scmp.ne.s32.totalorder %s27_s12, %s747_s30  ;;  %p753_p13 = scmp.lt.s32.totalorder %s747_s30, %s747_s30 }
  0x1c   :  { %p754_p0 = por %p753_p13, %p752_p12 }
  0x1e   :  { %p755_p1 = pnand %p754_p0, %p748_p11 }
  0x20   :  { %758 = shalt.err (!%p755_p1)
}
  0x21   :  { %29 = dma.hbm_to_vmem [thread:$0]  %s856_s1, 1024, %s27_s12, [#allocation6]  }
  0x22   :  { %781 = dma.done.wait [#allocation3], 1024  }
  0x23   :  { %782 = vsyncadd [#allocation3], 4294966272 }
  0x24   :  { %783 = dma.done.wait [#allocation6], 1024  }
  0x25   :  { %784 = vsyncadd [#allocation6], 4294966272  ;;  %v789_v0 = vmov 1.0   ;;  %v37_v1 = vld [vmem:[#allocation2 + $0x8] sm:$0xff]  ;;  %v36_v2 = vld [vmem:[#allocation2] sm:$0xff]  ;;  %vm66_vm0 = vcmask 523264   ;;  %v659_v48 = vlaneseq }
  0x26   :  { %153 = vmatprep.mubr.f32.mxu0 %v789_v0  ;;  %v45_v3 = vld [vmem:[#allocation5 + $0x8] sm:$0xff]  ;;  %379 = vmatprep.subr.mxu1 %v37_v1  ;;  %v76_v4 = vmul.f32 %v37_v1, %v37_v1  ;;  %v75_v5 = vmul.f32 %v36_v2, %v36_v2  ;;  %v44_v7 = vld [vmem:[#allocation5] sm:$0xff]  ;;  %v39_v8 = vld [vmem:[#allocation2 + $0x18] sm:$0xff]  ;;  %s790_s1 = smov [#allocation7]   ;;  %vm673_vm1 = vcmask 64512  }
  0x27   :  { %v53_v6 = vmul.f32 %v45_v3, %v45_v3  ;;  %443 = vmatprep.mubr.f32.mxu1 %v45_v3  ;;  %v38_v9 = vld [vmem:[#allocation2 + $0x10] sm:$0xff]  ;;  %380 = vmatpush1.xpose.msra.mxu1 %v36_v2  ;;  %v52_v10 = vmul.f32 %v44_v7, %v44_v7  ;;  %v78_v11 = vmul.f32 %v39_v8, %v39_v8  ;;  %v41_v13 = vld [vmem:[#allocation2 + $0x28] sm:$0xff]  ;;  %v47_v14 = vld [vmem:[#allocation5 + $0x18] sm:$0xff]  ;;  %v660_v49 = vshrl.u32 %v659_v48, 7  ;;  %s681_s4 = sshll.u32 %s790_s1, 4  ;;  %s682_s4 = int_to_ptr.vmem [resolvable:$true] %s681_s4 }
  0x28   :  { %v46_v12 = vld [vmem:[#allocation5 + $0x10] sm:$0xff]  ;;  %89 = vmatprep.subr.mxu0 %v76_v4  ;;  %449 = vmatprep.subr.mxu1 %v39_v8  ;;  %v77_v17 = vmul.f32 %v38_v9, %v38_v9  ;;  %v55_v18 = vmul.f32 %v47_v14, %v47_v14  ;;  %v80_v19 = vmul.f32 %v41_v13, %v41_v13  ;;  %v48_v20 = vld [vmem:[#allocation5 + $0x20] sm:$0xff]  ;;  %v49_v23 = vld [vmem:[#allocation5 + $0x28] sm:$0xff]  ;;  %s759_s5 = scalar_lea.vmem %s682_s4, 128  ;;  %p764_p3 = scmp.lt.s32.totalorder %s682_s4, %s682_s4 }
  0x29   :  { %v54_v15 = vmul.f32 %v46_v12, %v46_v12  ;;  %90 = vmatpush1.xpose.msra.mxu0 %v75_v5  ;;  %v60_v16 = vadd.f32 %v53_v6, %v52_v10  ;;  %v56_v22 = vmul.f32 %v48_v20, %v48_v20  ;;  %v57_v24 = vmul.f32 %v49_v23, %v49_v23  ;;  %v51_v25 = vld [vmem:[#allocation5 + $0x38] sm:$0xff]  ;;  %v40_v27 = vld [vmem:[#allocation2 + $0x20] sm:$0xff]  ;;  %v50_v28 = vld [vmem:[#allocation5 + $0x30] sm:$0xff]  ;;  %p760_p2 = scmp.ne.s32.totalorder %s682_s4, %s759_s5  ;;  %p765_p4 = scmp.lt.s32.totalorder %s759_s5, %s759_s5 }
  0x2a   :  { %444 = vmatmul.mubr.f32.vlgmr.msra.gmra.mrb[0].mxu1 %v44_v7  ;;  %159 = vmatprep.subr.mxu0 %v78_v11  ;;  %v59_v29 = vmul.f32 %v51_v25, %v51_v25  ;;  %v43_v30 = vld [vmem:[#allocation2 + $0x38] sm:$0xff]  ;;  %v58_v31 = vmul.f32 %v50_v28, %v50_v28  ;;  %v79_v33 = vmul.f32 %v40_v27, %v40_v27  ;;  %v42_v39 = vld [vmem:[#allocation2 + $0x30] sm:$0xff]  ;;  %v661_v50 = vsub.s32 0, %v660_v49 }
  0x2b   :  { %450 = vmatpush1.xpose.msra.mxu1 %v38_v9  ;;  %513 = vmatprep.mubr.f32.mxu1 %v47_v14  ;;  %v61_v21 = vadd.f32 %v60_v16, %v54_v15  ;;  %v82_v35 = vmul.f32 %v43_v30, %v43_v30  ;;  %v81_v40 = vmul.f32 %v42_v39, %v42_v39  ;;  %p766_p5 = por %p765_p4, %p764_p3 }
  0x2c   :  { %154 = vmatmul.mubr.f32.vlgmr.msra.gmra.mrb[0].mxu0 %v789_v0  ;;  %519 = vmatprep.subr.mxu1 %v41_v13  ;;  %v67_v36 = vsel %vm66_vm0, %v59_v29, 0.0 }
  0x2d   :  { %160 = vmatpush1.xpose.msra.mxu0 %v77_v17  ;;  %223 = vmatprep.mubr.f32.mxu0 %v789_v0  ;;  %v62_v26 = vadd.f32 %v61_v21, %v55_v18  ;;  %p767_p6 = pnand %p766_p5, %p760_p2 }
  0x2e   :  { %229 = vmatprep.subr.mxu0 %v80_v19 }
  0x2f   :  { %v63_v32 = vadd.f32 %v62_v26, %v56_v22 }
  0x31   :  { %v64_v34 = vadd.f32 %v63_v32, %v57_v24 }
  0x32   :  { %514 = vmatmul.mubr.f32.vlgmr.msra.gmra.mrb[0].mxu1 %v46_v12 }
  0x33   :  { %520 = vmatpush1.xpose.msra.mxu1 %v40_v27  ;;  %583 = vmatprep.mubr.f32.mxu1 %v49_v23  ;;  %v65_v37 = vadd.f32 %v64_v34, %v58_v31 }
  0x34   :  { %224 = vmatmul.mubr.f32.vlgmr.msra.gmra.mrb[0].mxu0 %v789_v0  ;;  %693 = vmatprep.subr.msk.mxu1 %vm66_vm0, %v43_v30 }
  0x35   :  { %230 = vmatpush1.xpose.msra.mxu0 %v79_v33  ;;  %293 = vmatprep.mubr.f32.mxu0 %v789_v0  ;;  %v68_v38 = vadd.f32 %v67_v36, %v65_v37 }
  0x36   :  { %691 = vmatprep.subr.msk.mxu0 %vm66_vm0, %v82_v35 }
  0x37   :  { %69 = vadd.xlane.f32.xlu0 %v68_v38 }
  0x3a   :  { %584 = vmatmul.mubr.f32.vlgmr.msra.gmra.mrb[0].mxu1 %v48_v20 }
  0x3b   :  { %590 = vmatpush1.xpose.msra.mxu1 %v42_v39  ;;  %694 = vmatprep.mubr.msk.f32.mxu1 %vm66_vm0, %v51_v25 }
  0x3c   :  { %294 = vmatmul.mubr.f32.vlgmr.msra.gmra.mrb[0].mxu0 %v789_v0 }
  0x3d   :  { %300 = vmatpush1.xpose.msra.mxu0 %v81_v40  ;;  %692 = vmatprep.mubr.msk.f32.mxu0 %vm66_vm0, %v789_v0 }
  0x42   :  { %654 = vmatmul.mubr.f32.vlgmr.msra.gmra.mrb[0].mxu1 %v50_v28 }
  0x44   :  { %364 = vmatmul.mubr.f32.vlgmr.msra.gmra.mrb[0].mxu0 %v789_v0 }
  0xc4   :  { %v70_v41 = vpop.xlane.xlu0 %69 }
  0xc5   :  { %v71_v42 = vmax.f32 %v70_v41, 1e-24 }
  0xc7   :  { %711 = vrsqrt.f32 %v71_v42 }
  0xd1   :  { %v712_v51 = vpop.eup %711 }
  0xd2   :  { %v73_v53 = vmul.f32 %v712_v51, %v70_v41 }
  0xd4   :  { %v74_v59 = vmul.f32 %v712_v51, %v73_v53 }
 0x115   :  { %v655_v43 = vpop.f32.mrb[0].mxu1 }
 0x116   :  { %v657_v44 = vpop.f32.mrb[1].mxu1  ;;  %v664_v56 = vmul.f32 2.0, %v655_v43 }
 0x117   :  { %v365_v45 = vpop.f32.mrb[0].mxu0 }
 0x118   :  { %v369_v46 = vmax.f32 %v365_v45, 1e-24  ;;  %v367_v47 = vpop.f32.mrb[1].mxu0 }
 0x11a   :  { %713 = vrsqrt.f32 %v369_v46 }
 0x124   :  { %v714_v52 = vpop.eup %713 }
 0x125   :  { %v371_v54 = vmul.f32 %v714_v52, %v365_v45  ;;  %v668_v55 = vrot.slane %v714_v52, %v661_v50 }
 0x127   :  { %v372_v57 = vmul.f32 %v714_v52, %v371_v54  ;;  %v669_v58 = vmul.f32 %v712_v51, %v668_v55 }
 0x129   :  { %v662_v60 = vrot.slane %v372_v57, %v661_v50  ;;  %v670_v61 = vmul.f32 %v669_v58, %v664_v56 }
 0x12b   :  { %v663_v62 = vadd.f32 %v662_v60, %v74_v59 }
 0x12d   :  { %v671_v63 = vsub.f32 %v663_v62, %v670_v61 }
 0x12f   :  { %v672_v0 = vmax.f32 %v671_v63, 0.0 }
 0x131   :  { %674 = vst.msk [vmem:[#allocation7] sm:$0xff] %vm673_vm1, %v672_v0 }
 0x132   :  { %770 = shalt.err (!%p767_p6)
}
 0x133   :  { %s771_s8 = scalar_lea.hbm %s857_s2, 128 }
 0x134   :  { %p772_p7 = scmp.ne.s32.totalorder %s857_s2, %s771_s8  ;;  %p775_p8 = scmp.lt.u32.totalorder %s771_s8, %s857_s2 }
 0x136   :  { %p777_p9 = pnand %p775_p8, %p772_p7 }
 0x138   :  { %780 = shalt.err (!%p777_p9)
}
 0x139   :  { %684 = dma.vmem_to_hbm [thread:$0]  %s682_s4, 128, %s857_s2, [#allocation4]  }
 0x13a   :  { %785 = dma.done.wait [#allocation4], 128  }
 0x13b   :  { %786 = vsyncadd [#allocation4], 4294967168 }
 0x13c   :  { %688 = vsyncpa [#allocation3], 1 }
 0x13d   :  { %689 = vsyncpa [#allocation6], 1 }
 0x13e   :  { %690 = vsyncpa [#allocation4], 1 }

</bundles_post_ra>
